<compile_context>
chip_gen: v5e
topology: v5e:2x2
jax: 0.10.0
libtpu: 0.0.40
codegen_flags: <defaults>
</compile_context>

<pallas_src>
import jax
import jax.numpy as jnp
from jax import lax
from jax.experimental import pallas as pl
from jax.experimental.pallas import tpu as pltpu

LEAKY_SLOPE = 0.01   # nn.LeakyReLU default
BN_EPS = 1e-5        # nn.BatchNorm1d default
LANE = 128           # TPU lane width
SUBLANE = 8          # fp32 sublane height (batch padding multiple)


# ----------------------------------------------------------------------------
# Shared math helpers (used inside kernels)
# ----------------------------------------------------------------------------
def _leaky_relu(x):
    return jnp.where(x > 0, x, LEAKY_SLOPE * x)


def _linear(x_f32, w_bf16, b_f32):
    # bf16 MXU matmul, fp32 accumulation. Weights already (in, out): no transpose.
    return jnp.dot(x_f32.astype(jnp.bfloat16), w_bf16,
                   preferred_element_type=jnp.float32) + b_f32


def _bn_train(x, gamma, beta, row_mask, inv_n):
    """BatchNorm1d training mode (biased batch variance).

    When `row_mask` is not None the batch dim is zero-padded: sums ignore the
    padded rows, the divisor is the true batch size, and padded rows of the
    output are re-zeroed so they never pollute later statistics.
    """
    if row_mask is None:
        mean = jnp.mean(x, axis=0, keepdims=True)
        xc = x - mean
        var = jnp.mean(xc * xc, axis=0, keepdims=True)
        return xc * lax.rsqrt(var + BN_EPS) * gamma + beta
    xm = x * row_mask
    mean = jnp.sum(xm, axis=0, keepdims=True) * inv_n
    xc = x - mean
    xcm = xc * row_mask
    var = jnp.sum(xcm * xcm, axis=0, keepdims=True) * inv_n
    return (xc * lax.rsqrt(var + BN_EPS) * gamma + beta) * row_mask


def _row_mask(batch, batch_p):
    if batch == batch_p:
        return None
    rows = lax.broadcasted_iota(jnp.int32, (batch_p, 1), 0)
    return (rows < batch).astype(jnp.float32)


# ----------------------------------------------------------------------------
# Kernels
# ----------------------------------------------------------------------------
def _make_resident_kernel(batch, batch_p, n_blk, unroll):
    """Single-step kernel: all weights resident in VMEM, blocks via fori_loop."""
    inv_n = 1.0 / batch

    def kernel(x_ref, w_in_ref, hv_ref, w_blk_ref, bgv_ref,
               w_out_ref, b_out_ref, o_ref):
        mask = _row_mask(batch, batch_p)

        # Head: Linear(latent, W) -> LeakyReLU -> BatchNorm1d.
        hv = hv_ref[...]                                 # (3, Wp): b_in, gamma0, beta0
        h = _linear(x_ref[...], w_in_ref[...], hv[0:1])
        h = _bn_train(_leaky_relu(h), hv[1:2], hv[2:3], mask, inv_n)

        if n_blk > 0:
            def body(i, h):
                w = w_blk_ref[i]                         # (Wp, Wp) bf16, dynamic index
                v = bgv_ref[i]                           # (3, Wp): bias, gamma, beta
                z = _linear(h, w, v[0:1])
                z = _bn_train(_leaky_relu(z), v[1:2], v[2:3], mask, inv_n)
                return h + z
            h = lax.fori_loop(0, n_blk, body, h, unroll=unroll)

        # Tail: Linear(W, input_dim).
        o_ref[...] = _linear(h, w_out_ref[...], b_out_ref[...]).astype(o_ref.dtype)

    return kernel


def _make_stream_kernel(batch, batch_p):
    """Depth-grid kernel: one residual block's weights streamed per grid step."""
    inv_n = 1.0 / batch

    def kernel(x_ref, w_in_ref, hv_ref, w_blk_ref, bgv_ref,
               w_out_ref, b_out_ref, o_ref, h_ref):
        i = pl.program_id(0)
        mask = _row_mask(batch, batch_p)

        # Head (step 0 only).
        @pl.when(i == 0)
        def _head():
            hv = hv_ref[...]
            h0 = _linear(x_ref[...], w_in_ref[...], hv[0:1])
            h_ref[...] = _bn_train(_leaky_relu(h0), hv[1:2], hv[2:3], mask, inv_n)

        # leaky_MLPBlock i:  h <- h + BN(LeakyReLU(Linear(h)))
        h = h_ref[...]
        v = bgv_ref[0]                                   # (3, Wp)
        z = _linear(h, w_blk_ref[0], v[0:1])
        z = _bn_train(_leaky_relu(z), v[1:2], v[2:3], mask, inv_n)
        h = h + z
        h_ref[...] = h

        # Tail (last step only).
        @pl.when(i == pl.num_programs(0) - 1)
        def _tail():
            o_ref[...] = _linear(h, w_out_ref[...], b_out_ref[...]).astype(o_ref.dtype)

    return kernel


# ----------------------------------------------------------------------------
# Wrapper
# ----------------------------------------------------------------------------
def _round_up(n, m):
    return ((n + m - 1) // m) * m


def _pad_last2(a, rows, cols):
    pad = ([(0, 0)] * (a.ndim - 2)
           + [(0, rows - a.shape[-2]), (0, cols - a.shape[-1])])
    return jnp.pad(a, pad)


def _vmem_capacity_bytes():
    try:
        return int(pltpu.get_tpu_info().vmem_capacity_bytes)
    except Exception:
        return 64 << 20          # conservative fallback (v7x per-core VMEM)


def prepare_params(params, *, depth):
    """One-time layout prep — call once per parameter set and cache the result.

    Pre-transposes weights to (in, out), zero-pads feature dims to 128 lanes
    (padded lanes stay exactly zero through LeakyReLU/BN/residual), casts the
    weights to bf16, and merges each layer's (bias, gamma, beta) into a single
    array so each forward issues no extra pad/transpose/cast HBM passes and one
    fewer DMA per residual block.
    """
    width, latent = params["w_in"].shape
    input_dim = params["w_out"].shape[0]
    lp, wp, ip = (_round_up(d, LANE) for d in (latent, width, input_dim))
    n_blk = depth - 1

    w_in = _pad_last2(params["w_in"].T, lp, wp).astype(jnp.bfloat16)
    head_vec = _pad_last2(
        jnp.concatenate([params["b_in"], params["g0"], params["be0"]], axis=0),
        3, wp)
    w_out = _pad_last2(params["w_out"].T, wp, ip).astype(jnp.bfloat16)
    b_out = _pad_last2(params["b_out"], 1, ip)

    if n_blk > 0:
        w_blk = _pad_last2(jnp.transpose(params["w_blk"][:n_blk], (0, 2, 1)),
                           wp, wp).astype(jnp.bfloat16)
        blk_vec = _pad_last2(
            jnp.concatenate([params["b_blk"][:n_blk], params["g_blk"][:n_blk],
                             params["be_blk"][:n_blk]], axis=1),
            3, wp)
    else:
        # Tiny unused placeholders so both kernels keep a single signature.
        w_blk = jnp.zeros((1, wp, wp), jnp.bfloat16)
        blk_vec = jnp.zeros((1, 3, wp), jnp.float32)

    return {"w_in": w_in, "head_vec": head_vec, "w_blk": w_blk,
            "blk_vec": blk_vec, "w_out": w_out, "b_out": b_out,
            "meta": (latent, width, input_dim, depth)}


def mlp_generator_forward(x, prepped, *, force_stream=False):
    """Forward pass.  x: (batch, latent_dim) float32; prepped: prepare_params()."""
    latent, width, input_dim, depth = prepped["meta"]
    batch = x.shape[0]
    lp, wp = prepped["w_in"].shape
    ip = prepped["w_out"].shape[1]
    n_blk = depth - 1

    # Pad batch to a sublane multiple; BN inside the kernels uses the true-batch
    # divisor + row mask, so padded rows never affect the statistics.
    batch_p = _round_up(batch, SUBLANE)
    xp = jnp.pad(x, ((0, batch_p - batch), (0, lp - latent)))

    cap = _vmem_capacity_bytes()
    vmem_limit = int(0.85 * cap)      # use real capacity: 128 MiB v5e/v6e, 64 MiB v7x

    f32, bf16 = 4, 2
    n_blk_eff = max(n_blk, 1)
    resident_bytes = (batch_p * lp * f32 + lp * wp * bf16 + 3 * wp * f32
                      + n_blk_eff * wp * wp * bf16 + n_blk_eff * 3 * wp * f32
                      + wp * ip * bf16 + ip * f32 + batch_p * ip * f32
                      + 3 * batch_p * wp * f32)           # h carry + temporaries
    fits_resident = resident_bytes + (2 << 20) <= int(0.40 * cap)

    args = (xp, prepped["w_in"], prepped["head_vec"], prepped["w_blk"],
            prepped["blk_vec"], prepped["w_out"], prepped["b_out"])

    if n_blk == 0 or (fits_resident and not force_stream):
        # --- Fast path: everything resident, residual blocks via fori_loop ---
        # Removes the ~0.35-0.6 us/step grid-pipeline overhead that dominates
        # at small/medium width.
        vm = pl.BlockSpec(memory_space=pltpu.MemorySpace.VMEM)
        kernel = _make_resident_kernel(batch, batch_p, n_blk, unroll=n_blk <= 8)
        out = pl.pallas_call(
            kernel,
            out_shape=jax.ShapeDtypeStruct((batch_p, ip), jnp.float32),
            in_specs=[vm] * len(args),
            out_specs=vm,
            compiler_params=pltpu.CompilerParams(vmem_limit_bytes=vmem_limit),
        )(*args)
        return out[:batch, :input_dim]

    # --- Streamed path: depth grid, one bf16 (Wp, Wp) block-weight DMA/step ---
    # Residents (constant block index, fetched once) use Buffered(1); the
    # streamed block weight + merged bias/gamma/beta keep default double
    # buffering so their DMA overlaps the previous block's matmul.
    # TODO(synk): for very large wp*ip on v7x, late-prefetch w_out via
    # memory_space=pl.ANY + manual make_async_copy instead of keeping it resident.
    kernel = _make_stream_kernel(batch, batch_p)
    res2 = lambda i: (0, 0)           # fetched once, stays in VMEM
    per_blk = lambda i: (i, 0, 0)     # pipelined HBM->VMEM per grid step

    def run(buffer_residents_once):
        res_mode = ({"pipeline_mode": pl.Buffered(1)}
                    if buffer_residents_once else {})
        grid_spec = pltpu.PrefetchScalarGridSpec(
            num_scalar_prefetch=0,
            grid=(n_blk,),
            in_specs=[
                pl.BlockSpec((batch_p, lp), res2, **res_mode),   # x
                pl.BlockSpec((lp, wp), res2, **res_mode),        # w_in  (in, out)
                pl.BlockSpec((3, wp), res2, **res_mode),         # b_in/gamma0/beta0
                pl.BlockSpec((1, wp, wp), per_blk),              # block weight (streamed)
                pl.BlockSpec((1, 3, wp), per_blk),               # block bias/gamma/beta
                pl.BlockSpec((wp, ip), res2, **res_mode),        # w_out (in, out)
                pl.BlockSpec((1, ip), res2, **res_mode),         # b_out
            ],
            out_specs=pl.BlockSpec((batch_p, ip), res2),         # written at last step
            scratch_shapes=[pltpu.VMEM((batch_p, wp), jnp.float32)],  # resident h
        )
        return pl.pallas_call(
            kernel,
            out_shape=jax.ShapeDtypeStruct((batch_p, ip), jnp.float32),
            grid_spec=grid_spec,
            compiler_params=pltpu.CompilerParams(
                dimension_semantics=("arbitrary",),   # h/output carried across depth
                vmem_limit_bytes=vmem_limit),
        )(*args)

    try:
        out = run(True)
    except Exception:
        # Graceful fallback if this jax version rejects Buffered(1) residents.
        out = run(False)
    return out[:batch, :input_dim]


# ----------------------------------------------------------------------------
# Parameters + pure-JAX reference
# ----------------------------------------------------------------------------
def init_params(key, input_dim, width, depth, latent_dim):
    """Deterministic PyTorch-style (U[-1/sqrt(fan_in), 1/sqrt(fan_in)]) init."""
    ks = jax.random.split(key, 6)

    def unif(k, shape, fan_in):
        bound = 1.0 / jnp.sqrt(jnp.float32(fan_in))
        return jax.random.uniform(k, shape, jnp.float32, -bound, bound)

    n_blk = depth - 1
    return {
        "w_in": unif(ks[0], (width, latent_dim), latent_dim),
        "b_in": unif(ks[1], (1, width), latent_dim),
        "g0": jnp.ones((1, width), jnp.float32),
        "be0": jnp.zeros((1, width), jnp.float32),
        "w_blk": unif(ks[2], (n_blk, width, width), width),
        "b_blk": unif(ks[3], (n_blk, 1, width), width),
        "g_blk": jnp.ones((n_blk, 1, width), jnp.float32),
        "be_blk": jnp.zeros((n_blk, 1, width), jnp.float32),
        "w_out": unif(ks[4], (input_dim, width), width),
        "b_out": unif(ks[5], (1, input_dim), width),
    }


def reference_forward(x, params, *, depth, matmul_dtype=jnp.float32):
    """Pure-JAX reference mirroring the PyTorch module (training-mode BN).

    matmul_dtype=bfloat16 reproduces the kernel's matmul precision (fp32
    accumulation); float32 is the exact PyTorch fp32 semantics.
    """
    def linear(a, w, b):
        return jnp.dot(a.astype(matmul_dtype), w.T.astype(matmul_dtype),
                       preferred_element_type=jnp.float32) + b

    def bn(h, gamma, beta):
        mean = jnp.mean(h, axis=0, keepdims=True)
        xc = h - mean
        var = jnp.mean(xc * xc, axis=0, keepdims=True)
        return xc * lax.rsqrt(var + BN_EPS) * gamma + beta

    h = linear(x, params["w_in"], params["b_in"])
    h = bn(_leaky_relu(h), params["g0"], params["be0"])
    for i in range(depth - 1):
        z = linear(h, params["w_blk"][i], params["b_blk"][i])
        z = bn(_leaky_relu(z), params["g_blk"][i], params["be_blk"][i])
        h = h + z
    return linear(h, params["w_out"], params["b_out"])


if __name__ == "__main__":
    input_dim, width, depth, latent_dim = 16, 32, 3, 8
    batch = 6            # deliberately not a multiple of 8: exercises masked-batch BN

    key = jax.random.PRNGKey(0)
    k_x, k_p = jax.random.split(key)
    x = jax.random.normal(k_x, (batch, latent_dim), jnp.float32)
    params = init_params(k_p, input_dim, width, depth, latent_dim)

    # One-time layout prep (hoisted out of the forward; reuse across calls).
    prepped = prepare_params(params, depth=depth)

    # Fast (all-resident, fori_loop) path.
    out = jax.block_until_ready(mlp_generator_forward(x, prepped))
    assert out.shape == (batch, input_dim)

    # Matched-precision check (bf16 matmul inputs, fp32 accumulation): tight.
    ref_bf16 = reference_forward(x, params, depth=depth, matmul_dtype=jnp.bfloat16)
    assert jnp.allclose(out, ref_bf16, atol=2e-3, rtol=2e-3), \
        float(jnp.max(jnp.abs(out - ref_bf16)))

    # Full-fp32 PyTorch-semantics check: loose (bf16 matmul rounding only).
    ref_f32 = reference_forward(x, params, depth=depth, matmul_dtype=jnp.float32)
    assert jnp.allclose(out, ref_f32, atol=1e-1, rtol=1e-1), \
        float(jnp.max(jnp.abs(out - ref_f32)))

    # Streamed (depth-grid, weight-streaming) path: identical numerics.
    out_s = jax.block_until_ready(
        mlp_generator_forward(x, prepped, force_stream=True))
    assert jnp.allclose(out_s, ref_bf16, atol=2e-3, rtol=2e-3), \
        float(jnp.max(jnp.abs(out_s - ref_bf16)))

    # depth == 1 guard path (no residual blocks).
    prepped1 = prepare_params(params, depth=1)
    out1 = jax.block_until_ready(mlp_generator_forward(x, prepped1))
    ref1 = reference_forward(x, params, depth=1, matmul_dtype=jnp.bfloat16)
    assert jnp.allclose(out1, ref1, atol=2e-3, rtol=2e-3), \
        float(jnp.max(jnp.abs(out1 - ref1)))

    print("KERNEL_OK")
</pallas_src>

<mosaic_0001>
module attributes {stable_mosaic.version = 11 : i64} {
  func.func @kernel(%arg0: memref<8x128xf32, #tpu.memory_space<vmem>>, %arg1: memref<128x128xbf16, #tpu.memory_space<vmem>>, %arg2: memref<3x128xf32, #tpu.memory_space<vmem>>, %arg3: memref<2x128x128xbf16, #tpu.memory_space<vmem>>, %arg4: memref<2x3x128xf32, #tpu.memory_space<vmem>>, %arg5: memref<128x128xbf16, #tpu.memory_space<vmem>>, %arg6: memref<1x128xf32, #tpu.memory_space<vmem>>, %arg7: memref<8x128xf32, #tpu.memory_space<vmem>>) attributes {dimension_semantics = [], scalar_prefetch = 0 : i64, scratch_operands = 0 : i64, tpu.core_type = #tpu.core_type<tc>} {
    %0 = tpu.iota {dimensions = array<i32: 0>} : vector<8x1xi32>
    %c6_i32 = arith.constant 6 : i32
    %1 = vector.broadcast %c6_i32 : i32 to vector<8x1xi32>
    %2 = arith.cmpi slt, %0, %1 : vector<8x1xi32>
    %3 = arith.extui %2 : vector<8x1xi1> to vector<8x1xi32>
    %4 = arith.sitofp %3 : vector<8x1xi32> to vector<8x1xf32>
    %c0 = arith.constant 0 : index
    %c0_0 = arith.constant 0 : index
    %5 = vector.load %arg2[%c0, %c0_0] : memref<3x128xf32, #tpu.memory_space<vmem>>, vector<3x128xf32>
    %c0_1 = arith.constant 0 : index
    %c0_2 = arith.constant 0 : index
    %6 = vector.load %arg0[%c0_1, %c0_2] : memref<8x128xf32, #tpu.memory_space<vmem>>, vector<8x128xf32>
    %c0_3 = arith.constant 0 : index
    %c0_4 = arith.constant 0 : index
    %7 = vector.load %arg1[%c0_3, %c0_4] : memref<128x128xbf16, #tpu.memory_space<vmem>>, vector<128x128xbf16>
    %8 = vector.extract_strided_slice %5 {offsets = [0, 0], sizes = [1, 128], strides = [1, 1]} : vector<3x128xf32> to vector<1x128xf32>
    %9 = arith.truncf %6 : vector<8x128xf32> to vector<8x128xbf16>
    %cst = arith.constant dense<0.000000e+00> : vector<8x128xf32>
    %10 = tpu.matmul %9, %7, %cst {dimension_numbers = #tpu.dot_dimension_numbers<[1], [0], [0], [1], [0, 0, 1, 1], [], []>} : vector<8x128xbf16>, vector<128x128xbf16>, vector<8x128xf32> -> vector<8x128xf32>
    %11 = vector.broadcast %8 : vector<1x128xf32> to vector<8x128xf32>
    %12 = arith.addf %10, %11 : vector<8x128xf32>
    %cst_5 = arith.constant 0.000000e+00 : f32
    %13 = vector.broadcast %cst_5 : f32 to vector<8x128xf32>
    %14 = arith.cmpf ogt, %12, %13 : vector<8x128xf32>
    %cst_6 = arith.constant 0.00999999977 : f32
    %15 = vector.broadcast %cst_6 : f32 to vector<8x128xf32>
    %16 = arith.mulf %15, %12 : vector<8x128xf32>
    %17 = arith.select %14, %12, %16 : vector<8x128xi1>, vector<8x128xf32>
    %18 = vector.extract_strided_slice %5 {offsets = [1, 0], sizes = [1, 128], strides = [1, 1]} : vector<3x128xf32> to vector<1x128xf32>
    %19 = vector.extract_strided_slice %5 {offsets = [2, 0], sizes = [1, 128], strides = [1, 1]} : vector<3x128xf32> to vector<1x128xf32>
    %20 = vector.broadcast %4 : vector<8x1xf32> to vector<8x128xf32>
    %21 = arith.mulf %17, %20 : vector<8x128xf32>
    %cst_7 = arith.constant dense<0.000000e+00> : vector<128xf32>
    %22 = vector.multi_reduction <add>, %21, %cst_7 [0] : vector<8x128xf32> to vector<128xf32>
    %23 = vector.shape_cast %22 : vector<128xf32> to vector<1x128xf32>
    %cst_8 = arith.constant 0.166666672 : f32
    %24 = vector.broadcast %cst_8 : f32 to vector<1x128xf32>
    %25 = arith.mulf %23, %24 : vector<1x128xf32>
    %26 = vector.broadcast %25 : vector<1x128xf32> to vector<8x128xf32>
    %27 = arith.subf %17, %26 : vector<8x128xf32>
    %28 = vector.broadcast %4 : vector<8x1xf32> to vector<8x128xf32>
    %29 = arith.mulf %27, %28 : vector<8x128xf32>
    %30 = arith.mulf %29, %29 : vector<8x128xf32>
    %cst_9 = arith.constant dense<0.000000e+00> : vector<128xf32>
    %31 = vector.multi_reduction <add>, %30, %cst_9 [0] : vector<8x128xf32> to vector<128xf32>
    %32 = vector.shape_cast %31 : vector<128xf32> to vector<1x128xf32>
    %cst_10 = arith.constant 0.166666672 : f32
    %33 = vector.broadcast %cst_10 : f32 to vector<1x128xf32>
    %34 = arith.mulf %32, %33 : vector<1x128xf32>
    %cst_11 = arith.constant 9.99999974E-6 : f32
    %35 = vector.broadcast %cst_11 : f32 to vector<1x128xf32>
    %36 = arith.addf %34, %35 : vector<1x128xf32>
    %37 = math.rsqrt %36 : vector<1x128xf32>
    %38 = vector.broadcast %37 : vector<1x128xf32> to vector<8x128xf32>
    %39 = arith.mulf %27, %38 : vector<8x128xf32>
    %40 = vector.broadcast %18 : vector<1x128xf32> to vector<8x128xf32>
    %41 = arith.mulf %39, %40 : vector<8x128xf32>
    %42 = vector.broadcast %19 : vector<1x128xf32> to vector<8x128xf32>
    %43 = arith.addf %41, %42 : vector<8x128xf32>
    %44 = vector.broadcast %4 : vector<8x1xf32> to vector<8x128xf32>
    %45 = arith.mulf %43, %44 : vector<8x128xf32>
    %c0_i32 = arith.constant 0 : i32
    %46 = arith.index_cast %c0_i32 : i32 to index
    %c0_12 = arith.constant 0 : index
    %c0_13 = arith.constant 0 : index
    %47 = vector.load %arg3[%46, %c0_12, %c0_13] : memref<2x128x128xbf16, #tpu.memory_space<vmem>>, vector<1x128x128xbf16>
    %48 = vector.shape_cast %47 : vector<1x128x128xbf16> to vector<128x128xbf16>
    %49 = arith.index_cast %c0_i32 : i32 to index
    %c0_14 = arith.constant 0 : index
    %c0_15 = arith.constant 0 : index
    %50 = vector.load %arg4[%49, %c0_14, %c0_15] : memref<2x3x128xf32, #tpu.memory_space<vmem>>, vector<1x3x128xf32>
    %51 = vector.shape_cast %50 : vector<1x3x128xf32> to vector<3x128xf32>
    %52 = vector.extract_strided_slice %51 {offsets = [0, 0], sizes = [1, 128], strides = [1, 1]} : vector<3x128xf32> to vector<1x128xf32>
    %53 = arith.truncf %45 : vector<8x128xf32> to vector<8x128xbf16>
    %cst_16 = arith.constant dense<0.000000e+00> : vector<8x128xf32>
    %54 = tpu.matmul %53, %48, %cst_16 {dimension_numbers = #tpu.dot_dimension_numbers<[1], [0], [0], [1], [0, 0, 1, 1], [], []>} : vector<8x128xbf16>, vector<128x128xbf16>, vector<8x128xf32> -> vector<8x128xf32>
    %55 = vector.broadcast %52 : vector<1x128xf32> to vector<8x128xf32>
    %56 = arith.addf %54, %55 : vector<8x128xf32>
    %cst_17 = arith.constant 0.000000e+00 : f32
    %57 = vector.broadcast %cst_17 : f32 to vector<8x128xf32>
    %58 = arith.cmpf ogt, %56, %57 : vector<8x128xf32>
    %cst_18 = arith.constant 0.00999999977 : f32
    %59 = vector.broadcast %cst_18 : f32 to vector<8x128xf32>
    %60 = arith.mulf %59, %56 : vector<8x128xf32>
    %61 = arith.select %58, %56, %60 : vector<8x128xi1>, vector<8x128xf32>
    %62 = vector.extract_strided_slice %51 {offsets = [1, 0], sizes = [1, 128], strides = [1, 1]} : vector<3x128xf32> to vector<1x128xf32>
    %63 = vector.extract_strided_slice %51 {offsets = [2, 0], sizes = [1, 128], strides = [1, 1]} : vector<3x128xf32> to vector<1x128xf32>
    %64 = vector.broadcast %4 : vector<8x1xf32> to vector<8x128xf32>
    %65 = arith.mulf %61, %64 : vector<8x128xf32>
    %cst_19 = arith.constant dense<0.000000e+00> : vector<128xf32>
    %66 = vector.multi_reduction <add>, %65, %cst_19 [0] : vector<8x128xf32> to vector<128xf32>
    %67 = vector.shape_cast %66 : vector<128xf32> to vector<1x128xf32>
    %cst_20 = arith.constant 0.166666672 : f32
    %68 = vector.broadcast %cst_20 : f32 to vector<1x128xf32>
    %69 = arith.mulf %67, %68 : vector<1x128xf32>
    %70 = vector.broadcast %69 : vector<1x128xf32> to vector<8x128xf32>
    %71 = arith.subf %61, %70 : vector<8x128xf32>
    %72 = vector.broadcast %4 : vector<8x1xf32> to vector<8x128xf32>
    %73 = arith.mulf %71, %72 : vector<8x128xf32>
    %74 = arith.mulf %73, %73 : vector<8x128xf32>
    %cst_21 = arith.constant dense<0.000000e+00> : vector<128xf32>
    %75 = vector.multi_reduction <add>, %74, %cst_21 [0] : vector<8x128xf32> to vector<128xf32>
    %76 = vector.shape_cast %75 : vector<128xf32> to vector<1x128xf32>
    %cst_22 = arith.constant 0.166666672 : f32
    %77 = vector.broadcast %cst_22 : f32 to vector<1x128xf32>
    %78 = arith.mulf %76, %77 : vector<1x128xf32>
    %cst_23 = arith.constant 9.99999974E-6 : f32
    %79 = vector.broadcast %cst_23 : f32 to vector<1x128xf32>
    %80 = arith.addf %78, %79 : vector<1x128xf32>
    %81 = math.rsqrt %80 : vector<1x128xf32>
    %82 = vector.broadcast %81 : vector<1x128xf32> to vector<8x128xf32>
    %83 = arith.mulf %71, %82 : vector<8x128xf32>
    %84 = vector.broadcast %62 : vector<1x128xf32> to vector<8x128xf32>
    %85 = arith.mulf %83, %84 : vector<8x128xf32>
    %86 = vector.broadcast %63 : vector<1x128xf32> to vector<8x128xf32>
    %87 = arith.addf %85, %86 : vector<8x128xf32>
    %88 = vector.broadcast %4 : vector<8x1xf32> to vector<8x128xf32>
    %89 = arith.mulf %87, %88 : vector<8x128xf32>
    %90 = arith.addf %45, %89 : vector<8x128xf32>
    %c1_i32 = arith.constant 1 : i32
    %91 = arith.index_cast %c1_i32 : i32 to index
    %c0_24 = arith.constant 0 : index
    %c0_25 = arith.constant 0 : index
    %92 = vector.load %arg3[%91, %c0_24, %c0_25] : memref<2x128x128xbf16, #tpu.memory_space<vmem>>, vector<1x128x128xbf16>
    %93 = vector.shape_cast %92 : vector<1x128x128xbf16> to vector<128x128xbf16>
    %94 = arith.index_cast %c1_i32 : i32 to index
    %c0_26 = arith.constant 0 : index
    %c0_27 = arith.constant 0 : index
    %95 = vector.load %arg4[%94, %c0_26, %c0_27] : memref<2x3x128xf32, #tpu.memory_space<vmem>>, vector<1x3x128xf32>
    %96 = vector.shape_cast %95 : vector<1x3x128xf32> to vector<3x128xf32>
    %97 = vector.extract_strided_slice %96 {offsets = [0, 0], sizes = [1, 128], strides = [1, 1]} : vector<3x128xf32> to vector<1x128xf32>
    %98 = arith.truncf %90 : vector<8x128xf32> to vector<8x128xbf16>
    %cst_28 = arith.constant dense<0.000000e+00> : vector<8x128xf32>
    %99 = tpu.matmul %98, %93, %cst_28 {dimension_numbers = #tpu.dot_dimension_numbers<[1], [0], [0], [1], [0, 0, 1, 1], [], []>} : vector<8x128xbf16>, vector<128x128xbf16>, vector<8x128xf32> -> vector<8x128xf32>
    %100 = vector.broadcast %97 : vector<1x128xf32> to vector<8x128xf32>
    %101 = arith.addf %99, %100 : vector<8x128xf32>
    %cst_29 = arith.constant 0.000000e+00 : f32
    %102 = vector.broadcast %cst_29 : f32 to vector<8x128xf32>
    %103 = arith.cmpf ogt, %101, %102 : vector<8x128xf32>
    %cst_30 = arith.constant 0.00999999977 : f32
    %104 = vector.broadcast %cst_30 : f32 to vector<8x128xf32>
    %105 = arith.mulf %104, %101 : vector<8x128xf32>
    %106 = arith.select %103, %101, %105 : vector<8x128xi1>, vector<8x128xf32>
    %107 = vector.extract_strided_slice %96 {offsets = [1, 0], sizes = [1, 128], strides = [1, 1]} : vector<3x128xf32> to vector<1x128xf32>
    %108 = vector.extract_strided_slice %96 {offsets = [2, 0], sizes = [1, 128], strides = [1, 1]} : vector<3x128xf32> to vector<1x128xf32>
    %109 = vector.broadcast %4 : vector<8x1xf32> to vector<8x128xf32>
    %110 = arith.mulf %106, %109 : vector<8x128xf32>
    %cst_31 = arith.constant dense<0.000000e+00> : vector<128xf32>
    %111 = vector.multi_reduction <add>, %110, %cst_31 [0] : vector<8x128xf32> to vector<128xf32>
    %112 = vector.shape_cast %111 : vector<128xf32> to vector<1x128xf32>
    %cst_32 = arith.constant 0.166666672 : f32
    %113 = vector.broadcast %cst_32 : f32 to vector<1x128xf32>
    %114 = arith.mulf %112, %113 : vector<1x128xf32>
    %115 = vector.broadcast %114 : vector<1x128xf32> to vector<8x128xf32>
    %116 = arith.subf %106, %115 : vector<8x128xf32>
    %117 = vector.broadcast %4 : vector<8x1xf32> to vector<8x128xf32>
    %118 = arith.mulf %116, %117 : vector<8x128xf32>
    %119 = arith.mulf %118, %118 : vector<8x128xf32>
    %cst_33 = arith.constant dense<0.000000e+00> : vector<128xf32>
    %120 = vector.multi_reduction <add>, %119, %cst_33 [0] : vector<8x128xf32> to vector<128xf32>
    %121 = vector.shape_cast %120 : vector<128xf32> to vector<1x128xf32>
    %cst_34 = arith.constant 0.166666672 : f32
    %122 = vector.broadcast %cst_34 : f32 to vector<1x128xf32>
    %123 = arith.mulf %121, %122 : vector<1x128xf32>
    %cst_35 = arith.constant 9.99999974E-6 : f32
    %124 = vector.broadcast %cst_35 : f32 to vector<1x128xf32>
    %125 = arith.addf %123, %124 : vector<1x128xf32>
    %126 = math.rsqrt %125 : vector<1x128xf32>
    %127 = vector.broadcast %126 : vector<1x128xf32> to vector<8x128xf32>
    %128 = arith.mulf %116, %127 : vector<8x128xf32>
    %129 = vector.broadcast %107 : vector<1x128xf32> to vector<8x128xf32>
    %130 = arith.mulf %128, %129 : vector<8x128xf32>
    %131 = vector.broadcast %108 : vector<1x128xf32> to vector<8x128xf32>
    %132 = arith.addf %130, %131 : vector<8x128xf32>
    %133 = vector.broadcast %4 : vector<8x1xf32> to vector<8x128xf32>
    %134 = arith.mulf %132, %133 : vector<8x128xf32>
    %135 = arith.addf %90, %134 : vector<8x128xf32>
    %c2_i32 = arith.constant 2 : i32
    %c0_36 = arith.constant 0 : index
    %c0_37 = arith.constant 0 : index
    %136 = vector.load %arg5[%c0_36, %c0_37] : memref<128x128xbf16, #tpu.memory_space<vmem>>, vector<128x128xbf16>
    %c0_38 = arith.constant 0 : index
    %c0_39 = arith.constant 0 : index
    %137 = vector.load %arg6[%c0_38, %c0_39] : memref<1x128xf32, #tpu.memory_space<vmem>>, vector<1x128xf32>
    %138 = arith.truncf %135 : vector<8x128xf32> to vector<8x128xbf16>
    %cst_40 = arith.constant dense<0.000000e+00> : vector<8x128xf32>
    %139 = tpu.matmul %138, %136, %cst_40 {dimension_numbers = #tpu.dot_dimension_numbers<[1], [0], [0], [1], [0, 0, 1, 1], [], []>} : vector<8x128xbf16>, vector<128x128xbf16>, vector<8x128xf32> -> vector<8x128xf32>
    %140 = vector.broadcast %137 : vector<1x128xf32> to vector<8x128xf32>
    %141 = arith.addf %139, %140 : vector<8x128xf32>
    %c0_41 = arith.constant 0 : index
    %c0_42 = arith.constant 0 : index
    %142 = vector.load %arg7[%c0_41, %c0_42] : memref<8x128xf32, #tpu.memory_space<vmem>>, vector<8x128xf32>
    tpu.vector_store %arg7[%c0_41, %c0_42], %141 {strides = array<i32>} : memref<8x128xf32, #tpu.memory_space<vmem>>, vector<8x128xf32>,
    return
  }
}

</mosaic_0001>

<bundles_post_ra>
// kernel: tpu_custom_call.1
= control target key start
LH: loop header
LB: loop body
LE: loop exit
PB: predicated region body
PF: predicated region fallthrough
CT: control target
= control target key end

     0   :  { %12 = vsyncpa [#allocation3], 0  ;;  %s917_s0 = inlined_call_operand.vmem [shape: f32[8,128], index: 0, kind: input, shape index: {}]   ;;  %s918_s1 = inlined_call_operand.hbm [shape: bf16[128,128], index: 1, kind: input, shape index: {}]   ;;  %s919_s2 = inlined_call_operand.vmem [shape: f32[3,128], index: 2, kind: input, shape index: {}]   ;;  %s920_s3 = inlined_call_operand.hbm [shape: bf16[2,128,128], index: 3, kind: input, shape index: {}]   ;;  %s921_s4 = inlined_call_operand.vmem [shape: f32[2,3,128], index: 4, kind: input, shape index: {}]   ;;  %s922_s5 = inlined_call_operand.hbm [shape: bf16[128,128], index: 5, kind: input, shape index: {}]   ;;  %s923_s6 = inlined_call_operand.vmem [shape: f32[1,128], index: 6, kind: input, shape index: {}]   ;;  %s924_s7 = inlined_call_operand.hbm [shape: f32[8,128], index: 7, kind: output, shape index: {}]  }
   0x1   :  { %13 = vsyncpa [#allocation6], 0 }
   0x2   :  { %14 = vsyncpa [#allocation4], 0  ;;  %s36_s26 = sshll.u32 %s920_s3, 4  ;;  %s817_s27 = smov [#allocation5]   ;;  %s37_s26 = int_to_ptr.hbm [resolvable:$true] %s36_s26 }
   0x3   :  { %s38_s28 = sshll.u32 %s817_s27, 4  ;;  %s21_s8 = sshll.u32 %s918_s1, 4  ;;  %s39_s28 = int_to_ptr.vmem [resolvable:$true] %s38_s28  ;;  %s22_s8 = int_to_ptr.hbm [resolvable:$true] %s21_s8 }
   0x4   :  { %s818_s9 = smov 64   ;;  %s819_s10 = smov 4  }
   0x5   :  { %44 = dma.hbm_to_vmem [thread:$0]  %s37_s26, 2048, %s39_s28, [#allocation6], %s818_s9, %s818_s9, %s819_s10  }
   0x6   :  { %s820_s11 = smov [#allocation2]   ;;  %s51_s15 = sshll.u32 %s922_s5, 4  ;;  %s52_s15 = int_to_ptr.hbm [resolvable:$true] %s51_s15 }
   0x7   :  { %s23_s12 = sshll.u32 %s820_s11, 4  ;;  %s821_s3 = smov [#allocation7]   ;;  %s24_s12 = int_to_ptr.vmem [resolvable:$true] %s23_s12 }
   0x8   :  { %29 = dma.hbm_to_vmem [thread:$0]  %s22_s8, 1024, %s24_s12, [#allocation3], %s818_s9, %s818_s9, %s819_s10  }
   0x9   :  { %s53_s16 = sshll.u32 %s821_s3, 4  ;;  %s54_s16 = int_to_ptr.vmem [resolvable:$true] %s53_s16 }
   0xa   :  { %59 = dma.hbm_to_vmem [thread:$0]  %s52_s15, 1024, %s54_s16, [#allocation6], %s818_s9, %s818_s9, %s819_s10  }
   0xb   :  { %811 = dma.done.wait [#allocation3], 1024  }
   0xc   :  { %812 = vsyncadd [#allocation3], 4294966272 }
   0xd   :  { %813 = dma.done.wait [#allocation6], 3072  }
   0xe   :  { %814 = vsyncadd [#allocation6], 4294964224  ;;  %v676_v0 = vld [vmem:[#allocation2 + $0x38] sm:$0xff]  ;;  %v675_v1 = vld [vmem:[#allocation2 + $0x30] sm:$0xff]  ;;  %v74_v10 = vlaneseq  ;;  %v822_v16 = vmov 0.0   ;;  %s823_s22 = smov [#allocation8]  }
   0xf   :  { %147 = vmatpush.bf16.msra.mxu0 %v676_v0  ;;  %v674_v2 = vld [vmem:[#allocation2 + $0x28] sm:$0xff]  ;;  %v673_v3 = vld [vmem:[#allocation2 + $0x20] sm:$0xff]  ;;  %v672_v4 = vld [vmem:[#allocation2 + $0x18] sm:$0xff]  ;;  %s526_s23 = sshll.u32 %s823_s22, 4  ;;  %s528_s26 = sshll.u32 %s924_s7, 4  ;;  %s527_s23 = int_to_ptr.vmem [resolvable:$true] %s526_s23  ;;  %s529_s26 = int_to_ptr.hbm [resolvable:$true] %s528_s26 }
  0x10   :  { %v671_v5 = vld [vmem:[#allocation2 + $0x10] sm:$0xff]  ;;  %v670_v6 = vld [vmem:[#allocation2 + $0x8] sm:$0xff]  ;;  %v669_v7 = vld [vmem:[#allocation2] sm:$0xff]  ;;  %v75_v12 = vshrl.u32 %v74_v10, 7 }
  0x11   :  { %v80_v8 = vld [vmem:[%s917_s0] sm:$0xff]  ;;  %v684_v21 = vld [vmem:[#allocation5 + $0x38] sm:$0xff]  ;;  %v683_v25 = vld [vmem:[#allocation5 + $0x30] sm:$0xff] }
  0x12   :  { %v97_v9 = vpack.c.bf16 %v80_v8, %v80_v8  ;;  %v879_v11 = vld [vmem:[%s919_s2] sm:$0x7]  ;;  %vm76_vm0 = vcmp.lt.s32.totalorder %v75_v12, 6  ;;  %265 = vmatpush.bf16.msra.mxu1 %v684_v21  ;;  %v682_v28 = vld [vmem:[#allocation5 + $0x28] sm:$0xff]  ;;  %v680_v34 = vld [vmem:[#allocation5 + $0x18] sm:$0xff] }
  0x13   :  { %148 = vmatpush.bf16.msra.mxu0 %v675_v1  ;;  %v98_v13 = vperm.slane %v879_v11, 0  ;;  %v882_v17 = vsel %vm76_vm0, 1.0, %v822_v16  ;;  %v681_v31 = vld [vmem:[#allocation5 + $0x20] sm:$0xff]  ;;  %v679_v37 = vld [vmem:[#allocation5 + $0x10] sm:$0xff]  ;;  %v678_v40 = vld [vmem:[#allocation5 + $0x8] sm:$0xff]  ;;  %v193_v54 = vperm.slane %v879_v11, 1 }
  0x14   :  { %v677_v42 = vld [vmem:[#allocation5] sm:$0xff]  ;;  %v195_v57 = vperm.slane %v879_v11, 2  ;;  %v691_v10 = vld [vmem:[#allocation5 + $0x70] sm:$0xff] }
  0x15   :  { %v214_v62 = vld [vmem:[%s921_s4] sm:$0x7] }
  0x16   :  { %266 = vmatpush.bf16.msra.mxu1 %v683_v25  ;;  %v216_v63 = vperm.slane %v214_v62, 0  ;;  %v689_v16 = vld [vmem:[#allocation5 + $0x60] sm:$0xff] }
  0x17   :  { %149 = vmatpush.bf16.msra.mxu0 %v674_v2 }
  0x1a   :  { %267 = vmatpush.bf16.msra.mxu1 %v682_v28  ;;  %v685_v28 = vld [vmem:[#allocation5 + $0x40] sm:$0xff] }
  0x1b   :  { %150 = vmatpush.bf16.msra.mxu0 %v673_v3 }
  0x1e   :  { %268 = vmatpush.bf16.msra.mxu1 %v681_v31 }
  0x1f   :  { %151 = vmatpush.bf16.msra.mxu0 %v672_v4 }
  0x22   :  { %269 = vmatpush.bf16.msra.mxu1 %v680_v34 }
  0x23   :  { %152 = vmatpush.bf16.msra.mxu0 %v671_v5 }
  0x26   :  { %270 = vmatpush.bf16.msra.mxu1 %v679_v37 }
  0x27   :  { %153 = vmatpush.bf16.msra.mxu0 %v670_v6 }
  0x2a   :  { %271 = vmatpush.bf16.msra.mxu1 %v678_v40 }
  0x2b   :  { %154 = vmatpush.bf16.msra.mxu0 %v669_v7  ;;  %v692_v7 = vld [vmem:[#allocation5 + $0x78] sm:$0xff] }
  0x2c   :  { %386 = vmatpush.bf16.msra.mxu2 %v692_v7 }
  0x2e   :  { %155 = vmatmul.bf16.vlgmr.msra.gmra.mxu0 %v97_v9  ;;  %272 = vmatpush.bf16.msra.mxu1 %v677_v42  ;;  %v313_v42 = vperm.slane %v214_v62, 2 }
  0x30   :  { %387 = vmatpush.bf16.msra.mxu2 %v691_v10  ;;  %v694_v10 = vld [vmem:[#allocation7 + $0x8] sm:$0xff] }
  0xab   :  { %v156_v14 = vpop.f32.mrf.mxu0 }
  0xac   :  { %v157_v15 = vadd.f32 %v156_v14, %v98_v13  ;;  %v690_v13 = vld [vmem:[#allocation5 + $0x68] sm:$0xff] }
  0xad   :  { %388 = vmatpush.bf16.msra.mxu2 %v690_v13  ;;  %v693_v13 = vld [vmem:[#allocation7] sm:$0xff] }
  0xae   :  { %vm160_vm1 = vcmp.gt.f32.partialorder %v157_v15, 0.0  ;;  %v161_v18 = vmul.f32 0.01, %v157_v15 }
  0xb0   :  { %v162_v19 = vsel %vm160_vm1, %v157_v15, %v161_v18 }
  0xb1   :  { %v163_v20 = vmul.f32 %v882_v17, %v162_v19  ;;  %389 = vmatpush.bf16.msra.mxu2 %v689_v16 }
  0xb3   :  { %v164_v22 = vrot.slane %v163_v20, 4  ;;  %v158_v23 = vpop.f32.mrf.mxu0 }
  0xb4   :  { %v687_v23 = vld [vmem:[#allocation5 + $0x50] sm:$0xff] }
  0xb5   :  { %v165_v24 = vadd.f32 %v164_v22, %v163_v20  ;;  %v688_v20 = vld [vmem:[#allocation5 + $0x58] sm:$0xff] }
  0xb6   :  { %390 = vmatpush.bf16.msra.mxu2 %v688_v20 }
  0xb7   :  { %v166_v26 = vrot.slane %v165_v24, 2 }
  0xb9   :  { %v167_v27 = vadd.f32 %v166_v26, %v165_v24  ;;  %v686_v26 = vld [vmem:[#allocation5 + $0x48] sm:$0xff] }
  0xba   :  { %391 = vmatpush.bf16.msra.mxu2 %v687_v23 }
  0xbb   :  { %v168_v29 = vrot.slane %v167_v27, 1 }
  0xbd   :  { %v169_v30 = vadd.f32 %v168_v29, %v167_v27 }
  0xbe   :  { %392 = vmatpush.bf16.msra.mxu2 %v686_v26 }
  0xbf   :  { %v170_v32 = vmul.f32 0.16666667, %v169_v30 }
  0xc1   :  { %v171_v33 = vsub.f32 %v162_v19, %v170_v32 }
  0xc2   :  { %393 = vmatpush.bf16.msra.mxu2 %v685_v28 }
  0xc3   :  { %v172_v35 = vmul.f32 %v882_v17, %v171_v33 }
  0xc5   :  { %v173_v36 = vmul.f32 %v172_v35, %v172_v35 }
  0xc7   :  { %v174_v38 = vrot.slane %v173_v36, 4 }
  0xc9   :  { %v175_v39 = vadd.f32 %v174_v38, %v173_v36 }
  0xcb   :  { %v176_v41 = vrot.slane %v175_v39, 2 }
  0xcd   :  { %v177_v43 = vadd.f32 %v176_v41, %v175_v39  ;;  %v311_v39 = vperm.slane %v214_v62, 1 }
  0xcf   :  { %v178_v44 = vrot.slane %v177_v43, 1 }
  0xd1   :  { %v179_v45 = vadd.f32 %v178_v44, %v177_v43 }
  0xd3   :  { %v180_v46 = vmul.f32 0.16666667, %v179_v45 }
  0xd5   :  { %v181_v47 = vadd.f32 1e-05, %v180_v46 }
  0xd7   :  { %709 = vrsqrt.f32 %v181_v47  ;;  %vm188_vm3 = vweird.f32 %v181_v47 }
  0xdd   :  { %v710_v48 = vpop.eup %709 }
  0xde   :  { %v183_v49 = vmul.f32 %v710_v48, %v181_v47  ;;  %vm189_vm2 = vweird.f32 %v710_v48 }
  0xdf   :  { %vm190_vm4 = vmor %vm188_vm3, %vm189_vm2 }
  0xe0   :  { %v184_v50 = vmul.f32 %v710_v48, %v183_v49 }
  0xe2   :  { %v185_v51 = vmul.f32 0.5, %v184_v50 }
  0xe4   :  { %v186_v52 = vsub.f32 1.5, %v185_v51 }
  0xe6   :  { %v187_v53 = vmul.f32 %v710_v48, %v186_v52 }
  0xe8   :  { %v191_v55 = vsel %vm190_vm4, %v710_v48, %v187_v53  ;;  %v604_v48 = vld [vmem:[%s921_s4 + $0x4] sm:$0x7] }
  0xe9   :  { %v192_v56 = vmul.f32 %v191_v55, %v171_v33  ;;  %v337_v49 = vperm.slane %v604_v48, 0  ;;  %v434_v28 = vperm.slane %v604_v48, 2 }
  0xeb   :  { %v194_v58 = vmul.f32 %v193_v54, %v192_v56 }
  0xed   :  { %v196_v59 = vadd.f32 %v195_v57, %v194_v58  ;;  %v700_v57 = vld [vmem:[#allocation7 + $0x38] sm:$0xff] }
  0xee   :  { %507 = vmatpush.bf16.msra.mxu3 %v700_v57 }
  0xef   :  { %v889_v60 = vmul.f32 %v882_v17, %v196_v59 }
  0xf1   :  { %v215_v61 = vpack.c.bf16 %v889_v60, %v889_v60 }
  0xf3   :  { %273 = vmatmul.bf16.vlgmr.msra.gmra.mxu1 %v215_v61 }
 0x170   :  { %v274_v0 = vpop.f32.mrf.mxu1 }
 0x171   :  { %v275_v1 = vadd.f32 %v274_v0, %v216_v63  ;;  %v698_v63 = vld [vmem:[#allocation7 + $0x28] sm:$0xff] }
 0x173   :  { %vm278_vm5 = vcmp.gt.f32.partialorder %v275_v1, 0.0  ;;  %v279_v2 = vmul.f32 0.01, %v275_v1 }
 0x175   :  { %v280_v3 = vsel %vm278_vm5, %v275_v1, %v279_v2  ;;  %v697_v2 = vld [vmem:[#allocation7 + $0x20] sm:$0xff] }
 0x176   :  { %v281_v4 = vmul.f32 %v882_v17, %v280_v3 }
 0x178   :  { %v282_v5 = vrot.slane %v281_v4, 4  ;;  %v276_v6 = vpop.f32.mrf.mxu1 }
 0x17a   :  { %v283_v8 = vadd.f32 %v282_v5, %v281_v4  ;;  %v696_v5 = vld [vmem:[#allocation7 + $0x18] sm:$0xff] }
 0x17c   :  { %v284_v9 = vrot.slane %v283_v8, 2 }
 0x17e   :  { %v285_v11 = vadd.f32 %v284_v9, %v283_v8  ;;  %v695_v8 = vld [vmem:[#allocation7 + $0x10] sm:$0xff] }
 0x180   :  { %v286_v12 = vrot.slane %v285_v11, 1 }
 0x182   :  { %v287_v14 = vadd.f32 %v286_v12, %v285_v11 }
 0x184   :  { %v288_v15 = vmul.f32 0.16666667, %v287_v14 }
 0x186   :  { %v289_v18 = vsub.f32 %v280_v3, %v288_v15 }
 0x188   :  { %v290_v19 = vmul.f32 %v882_v17, %v289_v18 }
 0x18a   :  { %v291_v21 = vmul.f32 %v290_v19, %v290_v19 }
 0x18c   :  { %v292_v22 = vrot.slane %v291_v21, 4 }
 0x18e   :  { %v293_v24 = vadd.f32 %v292_v22, %v291_v21 }
 0x190   :  { %v294_v25 = vrot.slane %v293_v24, 2 }
 0x192   :  { %v295_v27 = vadd.f32 %v294_v25, %v293_v24  ;;  %v432_v25 = vperm.slane %v604_v48, 1 }
 0x194   :  { %v296_v29 = vrot.slane %v295_v27, 1 }
 0x196   :  { %v297_v30 = vadd.f32 %v296_v29, %v295_v27 }
 0x198   :  { %v298_v31 = vmul.f32 0.16666667, %v297_v30 }
 0x19a   :  { %v299_v32 = vadd.f32 1e-05, %v298_v31 }
 0x19c   :  { %711 = vrsqrt.f32 %v299_v32  ;;  %vm306_vm7 = vweird.f32 %v299_v32 }
 0x1a2   :  { %v712_v33 = vpop.eup %711 }
 0x1a3   :  { %v301_v34 = vmul.f32 %v712_v33, %v299_v32  ;;  %vm307_vm6 = vweird.f32 %v712_v33 }
 0x1a4   :  { %vm308_vm8 = vmor %vm306_vm7, %vm307_vm6 }
 0x1a5   :  { %v302_v35 = vmul.f32 %v712_v33, %v301_v34  ;;  %v708_v34 = vld [vmem:[%s923_s6] ss:$0 sm:$0xff] }
 0x1a7   :  { %v303_v36 = vmul.f32 0.5, %v302_v35 }
 0x1a9   :  { %v304_v37 = vsub.f32 1.5, %v303_v36 }
 0x1ab   :  { %v305_v38 = vmul.f32 %v712_v33, %v304_v37 }
 0x1ad   :  { %v309_v40 = vsel %vm308_vm8, %v712_v33, %v305_v38 }
 0x1ae   :  { %v310_v41 = vmul.f32 %v309_v40, %v289_v18 }
 0x1b0   :  { %v312_v43 = vmul.f32 %v311_v39, %v310_v41 }
 0x1b2   :  { %v314_v44 = vadd.f32 %v313_v42, %v312_v43 }
 0x1b4   :  { %v315_v45 = vmul.f32 %v882_v17, %v314_v44 }
 0x1b6   :  { %v900_v46 = vadd.f32 %v315_v45, %v889_v60  ;;  %v699_v60 = vld [vmem:[#allocation7 + $0x30] sm:$0xff] }
 0x1b7   :  { %508 = vmatpush.bf16.msra.mxu3 %v699_v60 }
 0x1b8   :  { %v336_v47 = vpack.c.bf16 %v900_v46, %v900_v46 }
 0x1ba   :  { %394 = vmatmul.bf16.vlgmr.msra.gmra.mxu2 %v336_v47 }
 0x1bb   :  { %509 = vmatpush.bf16.msra.mxu3 %v698_v63 }
 0x1bf   :  { %510 = vmatpush.bf16.msra.mxu3 %v697_v2 }
 0x1c3   :  { %511 = vmatpush.bf16.msra.mxu3 %v696_v5 }
 0x1c7   :  { %512 = vmatpush.bf16.msra.mxu3 %v695_v8 }
 0x1cb   :  { %513 = vmatpush.bf16.msra.mxu3 %v694_v10 }
 0x1cf   :  { %514 = vmatpush.bf16.msra.mxu3 %v693_v13 }
 0x23d   :  { %v395_v50 = vpop.f32.mrf.mxu2 }
 0x23e   :  { %v396_v51 = vadd.f32 %v395_v50, %v337_v49 }
 0x240   :  { %vm399_vm9 = vcmp.gt.f32.partialorder %v396_v51, 0.0  ;;  %v400_v52 = vmul.f32 0.01, %v396_v51 }
 0x242   :  { %v401_v53 = vsel %vm399_vm9, %v396_v51, %v400_v52 }
 0x243   :  { %v402_v54 = vmul.f32 %v882_v17, %v401_v53 }
 0x245   :  { %v403_v55 = vrot.slane %v402_v54, 4  ;;  %v397_v56 = vpop.f32.mrf.mxu2 }
 0x247   :  { %v404_v58 = vadd.f32 %v403_v55, %v402_v54 }
 0x249   :  { %v405_v59 = vrot.slane %v404_v58, 2 }
 0x24b   :  { %v406_v61 = vadd.f32 %v405_v59, %v404_v58 }
 0x24d   :  { %v407_v62 = vrot.slane %v406_v61, 1 }
 0x24f   :  { %v408_v0 = vadd.f32 %v407_v62, %v406_v61 }
 0x251   :  { %v409_v1 = vmul.f32 0.16666667, %v408_v0 }
 0x253   :  { %v410_v3 = vsub.f32 %v401_v53, %v409_v1 }
 0x255   :  { %v411_v4 = vmul.f32 %v882_v17, %v410_v3 }
 0x257   :  { %v412_v6 = vmul.f32 %v411_v4, %v411_v4 }
 0x259   :  { %v413_v7 = vrot.slane %v412_v6, 4 }
 0x25b   :  { %v414_v9 = vadd.f32 %v413_v7, %v412_v6 }
 0x25d   :  { %v415_v11 = vrot.slane %v414_v9, 2 }
 0x25f   :  { %v416_v12 = vadd.f32 %v415_v11, %v414_v9 }
 0x261   :  { %v417_v14 = vrot.slane %v416_v12, 1 }
 0x263   :  { %v418_v15 = vadd.f32 %v417_v14, %v416_v12 }
 0x265   :  { %v419_v16 = vmul.f32 0.16666667, %v418_v15 }
 0x267   :  { %v420_v18 = vadd.f32 1e-05, %v419_v16 }
 0x269   :  { %713 = vrsqrt.f32 %v420_v18  ;;  %vm427_vm11 = vweird.f32 %v420_v18 }
 0x26f   :  { %v714_v19 = vpop.eup %713 }
 0x270   :  { %v422_v20 = vmul.f32 %v714_v19, %v420_v18  ;;  %vm428_vm10 = vweird.f32 %v714_v19 }
 0x271   :  { %vm429_vm12 = vmor %vm427_vm11, %vm428_vm10 }
 0x272   :  { %v423_v21 = vmul.f32 %v714_v19, %v422_v20 }
 0x274   :  { %v424_v22 = vmul.f32 0.5, %v423_v21 }
 0x276   :  { %v425_v23 = vsub.f32 1.5, %v424_v22 }
 0x278   :  { %v426_v24 = vmul.f32 %v714_v19, %v425_v23 }
 0x27a   :  { %v430_v26 = vsel %vm429_vm12, %v714_v19, %v426_v24 }
 0x27b   :  { %v431_v27 = vmul.f32 %v430_v26, %v410_v3 }
 0x27d   :  { %v433_v29 = vmul.f32 %v432_v25, %v431_v27 }
 0x27f   :  { %v435_v30 = vadd.f32 %v434_v28, %v433_v29 }
 0x281   :  { %v436_v31 = vmul.f32 %v882_v17, %v435_v30 }
 0x283   :  { %v437_v32 = vadd.f32 %v436_v31, %v900_v46 }
 0x285   :  { %v455_v33 = vpack.c.bf16 %v437_v32, %v437_v32 }
 0x287   :  { %515 = vmatmul.bf16.vlgmr.msra.gmra.mxu3 %v455_v33 }
 0x30a   :  { %v516_v35 = vpop.f32.mrf.mxu3 }
 0x30b   :  { %v517_v36 = vadd.f32 %v708_v34, %v516_v35 }
 0x30d   :  { %520 = vst [vmem:[#allocation8] sm:$0xff] %v517_v36 }
 0x30e   :  { %531 = dma.vmem_to_hbm [thread:$0]  %s527_s23, 128, %s529_s26, [#allocation4]  }
 0x312   :  { %v518_v17 = vpop.f32.mrf.mxu3 }
 0x313   :  { %815 = dma.done.wait [#allocation4], 128  }
 0x314   :  { %816 = vsyncadd [#allocation4], 4294967168 }
 0x315   :  { %536 = vsyncpa [#allocation3], 1 }
 0x316   :  { %537 = vsyncpa [#allocation6], 1 }
 0x317   :  { %538 = vsyncpa [#allocation4], 1 }

</bundles_post_ra>
